<compile_context>
chip_gen: v7x
topology: tpu7x:2x2x1
jax: 0.10.0
libtpu: 0.0.40
codegen_flags: <defaults>
</compile_context>

<pallas_src>
import functools

import jax
import jax.numpy as jnp
from jax import lax
from jax.experimental import pallas as pl
from jax.experimental.pallas import tpu as pltpu


def _round_up(x, m):
    return ((x + m - 1) // m) * m


def _vmem_budget():
    """Generation-aware planning budget / scoped VMEM limit (bytes)."""
    try:
        cap = int(pltpu.get_tpu_info().vmem_capacity_bytes)  # 128 MiB v5e/v6e, 64 MiB/TC v7x
    except Exception:
        cap = 64 * 1024 * 1024                               # conservative fallback
    cap = min(max(cap, 32 * 1024 * 1024), 128 * 1024 * 1024)
    budget = (cap * 5) // 8                # working-set planning budget
    limit = min((cap * 3) // 4, 100 * 1024 * 1024)   # scoped limit handed to Mosaic
    return budget, limit


_VMEM_BUDGET, _VMEM_LIMIT = _vmem_budget()


# ---------------------------------------------------------------------------
# Fused path: whole vocab in one block per M tile.
# ---------------------------------------------------------------------------
def _fused_kernel(x_ref, w_ref, b_ref, o_ref):
    # x: (tm, H)  w: (V, H)  b: (1, V)  o: (tm, V)
    logits = lax.dot_general(
        x_ref[...], w_ref[...],
        dimension_numbers=(((1,), (1,)), ((), ())),   # contract on H, no transpose
        preferred_element_type=jnp.float32,
    ) + b_ref[...].astype(jnp.float32)
    m = jnp.max(logits, axis=-1, keepdims=True)
    lse = m + jnp.log(jnp.sum(jnp.exp(logits - m), axis=-1, keepdims=True))
    o_ref[...] = (logits - lse).astype(o_ref.dtype)


# ---------------------------------------------------------------------------
# Tiled path: single kernel, two sweeps over the vocab axis per M tile.
#   sweep 1 (j <  num_v): projection + online LSE (+ stash logits in VMEM)
#   sweep 2 (j >= num_v): subtract LSE, write output block
# ---------------------------------------------------------------------------
def _tiled_kernel(x_ref, w_ref, b_ref, o_ref, m_sc, l_sc, *rest,
                  num_v, recompute):
    j = pl.program_id(1)
    logits_sc = None if recompute else rest[0]

    def _project():
        return lax.dot_general(
            x_ref[...], w_ref[...],
            dimension_numbers=(((1,), (1,)), ((), ())),
            preferred_element_type=jnp.float32,
        ) + b_ref[...].astype(jnp.float32)

    @pl.when(j == 0)
    def _():
        m_sc[...] = jnp.full_like(m_sc, -jnp.inf)
        l_sc[...] = jnp.zeros_like(l_sc)

    @pl.when(j < num_v)
    def _sweep1():
        logits = _project()
        m_prev = m_sc[...]
        m_new = jnp.maximum(m_prev, jnp.max(logits, axis=-1, keepdims=True))
        l_sc[...] = (l_sc[...] * jnp.exp(m_prev - m_new)
                     + jnp.sum(jnp.exp(logits - m_new), axis=-1, keepdims=True))
        m_sc[...] = m_new
        if not recompute:
            logits_sc[j] = logits            # stash raw logits in VMEM (no HBM trip)

    @pl.when(j >= num_v)
    def _sweep2():
        lse = m_sc[...] + jnp.log(l_sc[...])
        logits = _project() if recompute else logits_sc[j - num_v]
        o_ref[...] = (logits - lse).astype(o_ref.dtype)


# ---------------------------------------------------------------------------
# Tile planning against the generation-aware VMEM budget.
# ---------------------------------------------------------------------------
def _plan(M, H, V, x_bytes, w_bytes, budget, *, tm_req, tv_req,
          force_tiled, force_recompute):
    out_bytes = x_bytes
    sub = 8 if x_bytes >= 4 else 16
    M_pad = _round_up(M, sub)

    # ---- fused candidate: (V, H) weight resident, whole vocab per block ----
    def fused_fp(rows):
        return (2 * rows * H * x_bytes          # x tile (double-buffered)
                + 2 * V * H * w_bytes           # resident weight (2 pipeline buffers)
                + 2 * V * 4                     # bias
                + 2 * rows * V * out_bytes      # output tile
                + 3 * rows * V * 4)             # live f32 temporaries (logits/exp/cast)

    if not (force_tiled or force_recompute) and tv_req is None:
        rows = min(_round_up(256 if tm_req is None else tm_req, sub), M_pad)
        while fused_fp(rows) > budget and rows > sub:
            rows = max(sub, _round_up(rows // 2, sub))
        if fused_fp(rows) <= budget:
            return {"fused": True, "tm": rows}

    # ---- tiled candidate ----
    tm = min(_round_up(512 if tm_req is None else tm_req, sub), M_pad)
    if tm_req is None and M_pad >= 256:
        # keep >= 2 M tiles so both v7x TensorCores get work on the parallel axis
        tm = min(tm, _round_up(-(-M // 2), sub))

    tv0 = min(_round_up(2048 if tv_req is None else tv_req, 128), _round_up(V, 128))

    def tiled_fp(rows, cols, with_scratch):
        fp = (2 * rows * H * x_bytes            # x tile
              + 2 * cols * H * w_bytes          # streamed weight tile
              + 2 * cols * 4                    # bias tile
              + 2 * rows * cols * out_bytes     # output tile
              + 2 * rows * cols * 4             # f32 logits + exp temporaries
              + 8 * rows)                       # running max / sum-exp scratch
        if with_scratch:
            fp += rows * _round_up(V, cols) * 4   # resident logits scratch
        return fp

    if not force_recompute:
        rows, cols = tm, tv0
        while tiled_fp(rows, cols, True) > budget and cols > 128:
            cols = max(128, _round_up(cols // 2, 128))
        rows_floor = min(M_pad, _round_up(128 if tm_req is None else tm_req, sub))
        while tiled_fp(rows, cols, True) > budget and rows > rows_floor:
            rows = max(rows_floor, _round_up(rows // 2, sub))
        if tiled_fp(rows, cols, True) <= budget:
            return {"fused": False, "recompute": False, "tm": rows, "tv": cols}

    # ---- fallback: recompute the projection in sweep 2 (no (tm, V) scratch) ----
    rows, cols = tm, tv0
    while tiled_fp(rows, cols, False) > budget and cols > 128:
        cols = max(128, _round_up(cols // 2, 128))
    while tiled_fp(rows, cols, False) > budget and rows > sub:
        rows = max(sub, _round_up(rows // 2, sub))
    return {"fused": False, "recompute": True, "tm": rows, "tv": cols}


@functools.partial(jax.jit,
                   static_argnames=("tm", "tv", "force_tiled", "force_recompute"))
def norm_generator(decode_output, weight, bias, *, tm=None, tv=None,
                   force_tiled=False, force_recompute=False):
    """decode_output: [T, B, H]; weight: [V, H] (PyTorch Linear layout); bias: [V]."""
    T, B, H = decode_output.shape
    V, Hw = weight.shape
    assert Hw == H
    M = T * B
    out_dtype = decode_output.dtype
    x_bytes = decode_output.dtype.itemsize
    w_bytes = weight.dtype.itemsize

    plan = _plan(M, H, V, x_bytes, w_bytes, _VMEM_BUDGET,
                 tm_req=tm, tv_req=tv,
                 force_tiled=force_tiled, force_recompute=force_recompute)

    x = decode_output.reshape(M, H)

    if plan["fused"]:
        tm_eff = plan["tm"]
        cost = pl.CostEstimate(
            flops=2 * M * H * V, transcendentals=M * V,
            bytes_accessed=(M * H * x_bytes + V * H * w_bytes + V * 4
                            + M * V * x_bytes))
        out = pl.pallas_call(
            _fused_kernel,
            out_shape=jax.ShapeDtypeStruct((M, V), out_dtype),
            grid_spec=pltpu.PrefetchScalarGridSpec(
                num_scalar_prefetch=0,
                grid=(pl.cdiv(M, tm_eff),),
                in_specs=[
                    pl.BlockSpec((tm_eff, H), lambda i: (i, 0)),
                    pl.BlockSpec((V, H), lambda i: (0, 0)),     # resident weight (V, H)
                    pl.BlockSpec((1, V), lambda i: (0, 0)),
                ],
                out_specs=pl.BlockSpec((tm_eff, V), lambda i: (i, 0)),
            ),
            compiler_params=pltpu.CompilerParams(
                dimension_semantics=("parallel",),
                vmem_limit_bytes=_VMEM_LIMIT),
            cost_estimate=cost,
        )(x, weight, bias.reshape(1, V))
        return out.reshape(T, B, V)

    # ---------------- tiled path ----------------
    tm_eff, tv_eff, recompute = plan["tm"], plan["tv"], plan["recompute"]
    V_pad = _round_up(V, tv_eff)
    num_m = pl.cdiv(M, tm_eff)
    num_v = V_pad // tv_eff

    # Pad the vocab axis once in the wrapper (zero weight rows, very negative
    # bias) so every weight tile is full and no per-tile masking is needed.
    if V_pad != V:
        weight_p = jnp.pad(weight, ((0, V_pad - V), (0, 0)))
        bias_p = jnp.concatenate(
            [bias, jnp.full((V_pad - V,), -1e30, dtype=bias.dtype)])
    else:
        weight_p, bias_p = weight, bias
    b2d = bias_p.reshape(1, V_pad)

    if recompute:
        # sweep 2 re-streams the weight tiles to recompute the projection
        w_map = lambda i, j: (jnp.where(j < num_v, j, j - num_v), 0)
        b_map = lambda i, j: (0, jnp.where(j < num_v, j, j - num_v))
    else:
        # sweep 2 reads the stashed logits; clamp so no new weight/bias DMAs
        w_map = lambda i, j: (jnp.minimum(j, num_v - 1), 0)
        b_map = lambda i, j: (0, jnp.minimum(j, num_v - 1))
    # output block stays parked at (i, 0) during sweep 1 (never written, never
    # flushed), then walks the vocab blocks during sweep 2.
    o_map = lambda i, j: (i, jnp.where(j < num_v, 0, j - num_v))

    scratch = [pltpu.VMEM((tm_eff, 1), jnp.float32),
               pltpu.VMEM((tm_eff, 1), jnp.float32)]
    if not recompute:
        scratch.append(pltpu.VMEM((num_v, tm_eff, tv_eff), jnp.float32))

    weight_passes = 2 if recompute else 1
    cost = pl.CostEstimate(
        flops=2 * M * H * V_pad * weight_passes,
        transcendentals=M * V_pad,
        bytes_accessed=(M * H * x_bytes
                        + num_m * V_pad * H * w_bytes * weight_passes
                        + V_pad * 4 + M * V * x_bytes))

    out = pl.pallas_call(
        functools.partial(_tiled_kernel, num_v=num_v, recompute=recompute),
        out_shape=jax.ShapeDtypeStruct((M, V), out_dtype),
        grid_spec=pltpu.PrefetchScalarGridSpec(
            num_scalar_prefetch=0,
            grid=(num_m, 2 * num_v),            # vocab axis swept twice per M tile
            in_specs=[
                pl.BlockSpec((tm_eff, H), lambda i, j: (i, 0)),
                pl.BlockSpec((tv_eff, H), w_map),
                pl.BlockSpec((1, tv_eff), b_map),
            ],
            out_specs=pl.BlockSpec((tm_eff, tv_eff), o_map),
            scratch_shapes=scratch,
        ),
        compiler_params=pltpu.CompilerParams(
            dimension_semantics=("parallel", "arbitrary"),
            vmem_limit_bytes=_VMEM_LIMIT),
        cost_estimate=cost,
    )(x, weight_p, b2d)
    return out.reshape(T, B, V)


if __name__ == "__main__":
    # Small shapes consistent with the forward: [T, B, H] -> [T, B, V]
    T, B, H = 8, 2, 32          # seq=8, batch=2, d_model=32
    V = 256                     # vocab_size (lane-aligned)

    key = jax.random.PRNGKey(0)
    kx, kw, kb = jax.random.split(key, 3)

    decode_output = jax.random.normal(kx, (T, B, H), dtype=jnp.float32)

    # Deterministic parameter init (PyTorch Linear-style uniform bound 1/sqrt(H))
    bound = 1.0 / (H ** 0.5)
    weight = jax.random.uniform(kw, (V, H), minval=-bound, maxval=bound,
                                dtype=jnp.float32)
    bias = jax.random.uniform(kb, (V,), minval=-bound, maxval=bound,
                              dtype=jnp.float32)

    ref = jax.nn.log_softmax(decode_output @ weight.T + bias, axis=-1)

    # Default path (fused at these small shapes; tiled path kicks in for large V*H).
    out = jax.block_until_ready(norm_generator(decode_output, weight, bias))
    assert out.shape == (T, B, V)
    assert jnp.allclose(out, ref, atol=1e-4, rtol=1e-4)

    # Force the tiled path (VMEM logits scratch, two sweeps over vocab tiles).
    out_tiled = jax.block_until_ready(
        norm_generator(decode_output, weight, bias, tm=8, tv=128, force_tiled=True))
    assert jnp.allclose(out_tiled, ref, atol=1e-4, rtol=1e-4)

    # Force the recompute fallback (no logits scratch, projection redone in sweep 2).
    out_rc = jax.block_until_ready(
        norm_generator(decode_output, weight, bias, tm=8, tv=128,
                       force_tiled=True, force_recompute=True))
    assert jnp.allclose(out_rc, ref, atol=1e-4, rtol=1e-4)

    # Non-multiple-of-128 vocab exercises the wrapper-side weight/bias padding.
    V2 = 200
    weight2 = weight[:V2]
    bias2 = bias[:V2]
    ref2 = jax.nn.log_softmax(decode_output @ weight2.T + bias2, axis=-1)
    out2 = jax.block_until_ready(
        norm_generator(decode_output, weight2, bias2, tm=16, tv=128, force_tiled=True))
    assert out2.shape == (T, B, V2)
    assert jnp.allclose(out2, ref2, atol=1e-4, rtol=1e-4)

    print("KERNEL_OK")
</pallas_src>

<mosaic_0001>
module attributes {stable_mosaic.version = 11 : i64} {
  func.func @_fused_kernel(%arg0: i32, %arg1: memref<16x32xf32, #tpu.memory_space<vmem>>, %arg2: memref<256x32xf32, #tpu.memory_space<vmem>>, %arg3: memref<1x256xf32, #tpu.memory_space<vmem>>, %arg4: memref<16x256xf32, #tpu.memory_space<vmem>>) attributes {dimension_semantics = [#tpu.dimension_semantics<parallel>], iteration_bounds = array<i64: 1>, scalar_prefetch = 0 : i64, scratch_operands = 0 : i64, tpu.core_type = #tpu.core_type<tc>, window_params = [{transform_indices = @transform_0, window_bounds = array<i64: 16, 32>}, {pipeline_mode = #tpu.pipeline_mode<synchronous>, transform_indices = @transform_1, window_bounds = array<i64: 256, 32>}, {pipeline_mode = #tpu.pipeline_mode<synchronous>, transform_indices = @transform_2, window_bounds = array<i64: 1, 256>}, {transform_indices = @transform_3, window_bounds = array<i64: 16, 256>}]} {
    %c0 = arith.constant 0 : index
    %c0_0 = arith.constant 0 : index
    %0 = vector.load %arg1[%c0, %c0_0] : memref<16x32xf32, #tpu.memory_space<vmem>>, vector<16x32xf32>
    %c0_1 = arith.constant 0 : index
    %c0_2 = arith.constant 0 : index
    %1 = vector.load %arg2[%c0_1, %c0_2] : memref<256x32xf32, #tpu.memory_space<vmem>>, vector<256x32xf32>
    %cst = arith.constant dense<0.000000e+00> : vector<16x256xf32>
    %2 = tpu.matmul %0, %1, %cst {dimension_numbers = #tpu.dot_dimension_numbers<[1], [1], [0], [0], [0, 0, 1, 0], [], []>} : vector<16x32xf32>, vector<256x32xf32>, vector<16x256xf32> -> vector<16x256xf32>
    %c0_3 = arith.constant 0 : index
    %c0_4 = arith.constant 0 : index
    %3 = vector.load %arg3[%c0_3, %c0_4] : memref<1x256xf32, #tpu.memory_space<vmem>>, vector<1x256xf32>
    %4 = vector.broadcast %3 : vector<1x256xf32> to vector<16x256xf32>
    %5 = arith.addf %2, %4 : vector<16x256xf32>
    %cst_5 = arith.constant dense<0xFF800000> : vector<16xf32>
    %6 = vector.multi_reduction <maximumf>, %5, %cst_5 [1] : vector<16x256xf32> to vector<16xf32>
    %7 = vector.shape_cast %6 : vector<16xf32> to vector<16x1xf32>
    %8 = vector.broadcast %7 : vector<16x1xf32> to vector<16x256xf32>
    %9 = arith.subf %5, %8 : vector<16x256xf32>
    %10 = math.exp %9 : vector<16x256xf32>
    %cst_6 = arith.constant dense<0.000000e+00> : vector<16xf32>
    %11 = vector.multi_reduction <add>, %10, %cst_6 [1] : vector<16x256xf32> to vector<16xf32>
    %12 = vector.shape_cast %11 : vector<16xf32> to vector<16x1xf32>
    %13 = math.log %12 : vector<16x1xf32>
    %14 = arith.addf %7, %13 : vector<16x1xf32>
    %15 = vector.broadcast %14 : vector<16x1xf32> to vector<16x256xf32>
    %16 = arith.subf %5, %15 : vector<16x256xf32>
    %c0_7 = arith.constant 0 : index
    %c0_8 = arith.constant 0 : index
    %17 = vector.load %arg4[%c0_7, %c0_8] : memref<16x256xf32, #tpu.memory_space<vmem>>, vector<16x256xf32>
    tpu.vector_store %arg4[%c0_7, %c0_8], %16 {strides = array<i32>} : memref<16x256xf32, #tpu.memory_space<vmem>>, vector<16x256xf32>,
    return
  }
  func.func @transform_0(%arg0: i32) -> (i32, i32) {
    %c0_i32 = arith.constant 0 : i32
    %c0_i32_0 = arith.constant 0 : i32
    return %arg0, %c0_i32 : i32, i32
  }
  func.func @transform_1(%arg0: i32) -> (i32, i32) {
    %c0_i32 = arith.constant 0 : i32
    %c0_i32_0 = arith.constant 0 : i32
    %c0_i32_1 = arith.constant 0 : i32
    return %c0_i32, %c0_i32_0 : i32, i32
  }
  func.func @transform_2(%arg0: i32) -> (i32, i32) {
    %c0_i32 = arith.constant 0 : i32
    %c0_i32_0 = arith.constant 0 : i32
    %c0_i32_1 = arith.constant 0 : i32
    return %c0_i32, %c0_i32_0 : i32, i32
  }
  func.func @transform_3(%arg0: i32) -> (i32, i32) {
    %c0_i32 = arith.constant 0 : i32
    %c0_i32_0 = arith.constant 0 : i32
    return %arg0, %c0_i32 : i32, i32
  }
}

</mosaic_0001>

<bundles_post_ra>
// kernel: norm_generator.1
= control target key start
LH: loop header
LB: loop body
LE: loop exit
PB: predicated region body
PF: predicated region fallthrough
CT: control target
= control target key end

     0   :  { %vm60_vm0 = vcmask 261120   ;;  %v50_v51 = vlaneseq  ;;  %s647_s1 = inlined_call_operand.vmem [shape: f32[256,32], index: 1, kind: input, shape index: {}]   ;;  %s648_s0 = inlined_call_operand.vmem [shape: f32[16,32], index: 0, kind: input, shape index: {}]   ;;  %s649_s2 = inlined_call_operand.vmem [shape: f32[1,256], index: 2, kind: input, shape index: {}]   ;;  %s650_s3 = inlined_call_operand.vmem [shape: f32[16,256], index: 3, kind: output, shape index: {}]  }
   0x1   :  { %v32_v0 = vld [vmem:[%s647_s1 + $0x80] sm:$0xff]  ;;  %v33_v1 = vld [vmem:[%s647_s1 + $0x88] sm:$0xff]  ;;  %vm456_vm1 = vmpackc.low %vm60_vm0, %vm60_vm0 }
   0x2   :  { %v352_v3 = vpack.c.bf16 %v33_v1, %v32_v0  ;;  %v16_v4 = vld [vmem:[%s647_s1] sm:$0xff]  ;;  %v17_v5 = vld [vmem:[%s647_s1 + $0x8] sm:$0xff]  ;;  %v34_v6 = vld [vmem:[%s647_s1 + $0x90] sm:$0xff]  ;;  %v51_v52 = vshrl.u32 %v50_v51, 7 }
   0x3   :  { %v355_v7 = vpack.c.bf16 %v17_v5, %v16_v4  ;;  %v35_v8 = vld [vmem:[%s647_s1 + $0x98] sm:$0xff]  ;;  %v18_v10 = vld [vmem:[%s647_s1 + $0x10] sm:$0xff]  ;;  %v36_v12 = vld [vmem:[%s647_s1 + $0xa0] sm:$0xff] }
   0x4   :  { %354 = vmatprep.subr.msk.bf16.mxu0 %vm456_vm1, %v352_v3  ;;  %400 = vmatprep.subr.msk.bf16.mxu1 %vm456_vm1, %v352_v3  ;;  %v358_v9 = vpack.c.bf16 %v35_v8, %v34_v6  ;;  %v19_v11 = vld [vmem:[%s647_s1 + $0x18] sm:$0xff]  ;;  %v37_v13 = vld [vmem:[%s647_s1 + $0xa8] sm:$0xff]  ;;  %v499_v16 = vld [vmem:[%s648_s0] sm:$0xff]  ;;  %v52_v53 = vsub.s32 0, %v51_v52  ;;  %v56_v55 = vsub.s32 1, %v51_v52 }
   0x5   :  { %357 = vmatpush3.bf16.xpose.msk.msra.mxu0 %vm456_vm1, %v355_v7  ;;  %408 = vmatpush3.bf16.xpose.msk.msra.mxu1 %vm456_vm1, %v355_v7  ;;  %v361_v14 = vpack.c.bf16 %v19_v11, %v18_v10  ;;  %v364_v15 = vpack.c.bf16 %v37_v13, %v36_v12  ;;  %v504_v17 = vld [vmem:[%s648_s0 + $0x8] sm:$0xff]  ;;  %v20_v18 = vld [vmem:[%s647_s1 + $0x20] sm:$0xff]  ;;  %v38_v20 = vld [vmem:[%s647_s1 + $0xb0] sm:$0xff] }
   0x6   :  { %360 = vmatprep.subr.msk.bf16.mxu0 %vm456_vm1, %v358_v9  ;;  %401 = vmatprep.subr.msk.bf16.mxu1 %vm456_vm1, %v358_v9  ;;  %v21_v19 = vld [vmem:[%s647_s1 + $0x28] sm:$0xff]  ;;  %v39_v21 = vld [vmem:[%s647_s1 + $0xb8] sm:$0xff]  ;;  %v22_v24 = vld [vmem:[%s647_s1 + $0x30] sm:$0xff] }
   0x7   :  { %348 = vmatprep.mubr.msk.f32.mxu0 %vm60_vm0, %v499_v16  ;;  %350 = vmatprep.mubr.msk.f32.mxu1 %vm60_vm0, %v504_v17  ;;  %v367_v22 = vpack.c.bf16 %v21_v19, %v20_v18  ;;  %v370_v23 = vpack.c.bf16 %v39_v21, %v38_v20  ;;  %v23_v25 = vld [vmem:[%s647_s1 + $0x38] sm:$0xff]  ;;  %v40_v26 = vld [vmem:[%s647_s1 + $0xc0] sm:$0xff]  ;;  %v41_v27 = vld [vmem:[%s647_s1 + $0xc8] sm:$0xff] }
   0x8   :  { %v373_v28 = vpack.c.bf16 %v23_v25, %v22_v24  ;;  %v376_v29 = vpack.c.bf16 %v41_v27, %v40_v26  ;;  %v24_v30 = vld [vmem:[%s647_s1 + $0x40] sm:$0xff]  ;;  %v25_v31 = vld [vmem:[%s647_s1 + $0x48] sm:$0xff]  ;;  %v42_v32 = vld [vmem:[%s647_s1 + $0xd0] sm:$0xff] }
   0x9   :  { %v43_v33 = vld [vmem:[%s647_s1 + $0xd8] sm:$0xff]  ;;  %v379_v34 = vpack.c.bf16 %v25_v31, %v24_v30  ;;  %v26_v36 = vld [vmem:[%s647_s1 + $0x50] sm:$0xff]  ;;  %v44_v38 = vld [vmem:[%s647_s1 + $0xe0] sm:$0xff] }
   0xa   :  { %v382_v35 = vpack.c.bf16 %v43_v33, %v42_v32  ;;  %v27_v37 = vld [vmem:[%s647_s1 + $0x58] sm:$0xff]  ;;  %v45_v39 = vld [vmem:[%s647_s1 + $0xe8] sm:$0xff]  ;;  %v28_v42 = vld [vmem:[%s647_s1 + $0x60] sm:$0xff] }
   0xb   :  { %v385_v40 = vpack.c.bf16 %v27_v37, %v26_v36  ;;  %v388_v41 = vpack.c.bf16 %v45_v39, %v44_v38  ;;  %v29_v43 = vld [vmem:[%s647_s1 + $0x68] sm:$0xff]  ;;  %v46_v44 = vld [vmem:[%s647_s1 + $0xf0] sm:$0xff]  ;;  %v47_v45 = vld [vmem:[%s647_s1 + $0xf8] sm:$0xff] }
   0xc   :  { %v391_v46 = vpack.c.bf16 %v29_v43, %v28_v42  ;;  %v394_v47 = vpack.c.bf16 %v47_v45, %v46_v44  ;;  %v30_v48 = vld [vmem:[%s647_s1 + $0x70] sm:$0xff]  ;;  %v31_v49 = vld [vmem:[%s647_s1 + $0x78] sm:$0xff]  ;;  %v48_v54 = vld [vmem:[%s649_s2] sm:$0x3] }
   0xd   :  { %363 = vmatpush3.bf16.xpose.msk.msra.mxu0 %vm456_vm1, %v361_v14  ;;  %409 = vmatpush3.bf16.xpose.msk.msra.mxu1 %vm456_vm1, %v361_v14  ;;  %v397_v50 = vpack.c.bf16 %v31_v49, %v30_v48  ;;  %v53_v56 = vrot.slane %v48_v54, %v52_v53  ;;  %v57_v57 = vrot.slane %v48_v54, %v56_v55 }
   0xe   :  { %366 = vmatprep.subr.msk.bf16.mxu0 %vm456_vm1, %v364_v15  ;;  %402 = vmatprep.subr.msk.bf16.mxu1 %vm456_vm1, %v364_v15 }
  0x15   :  { %369 = vmatpush3.bf16.xpose.msk.msra.mxu0 %vm456_vm1, %v367_v22  ;;  %410 = vmatpush3.bf16.xpose.msk.msra.mxu1 %vm456_vm1, %v367_v22 }
  0x16   :  { %372 = vmatprep.subr.msk.bf16.mxu0 %vm456_vm1, %v370_v23  ;;  %403 = vmatprep.subr.msk.bf16.mxu1 %vm456_vm1, %v370_v23 }
  0x1d   :  { %375 = vmatpush3.bf16.xpose.msk.msra.mxu0 %vm456_vm1, %v373_v28  ;;  %411 = vmatpush3.bf16.xpose.msk.msra.mxu1 %vm456_vm1, %v373_v28 }
  0x1e   :  { %378 = vmatprep.subr.msk.bf16.mxu0 %vm456_vm1, %v376_v29  ;;  %404 = vmatprep.subr.msk.bf16.mxu1 %vm456_vm1, %v376_v29 }
  0x25   :  { %381 = vmatpush3.bf16.xpose.msk.msra.mxu0 %vm456_vm1, %v379_v34  ;;  %412 = vmatpush3.bf16.xpose.msk.msra.mxu1 %vm456_vm1, %v379_v34 }
  0x26   :  { %384 = vmatprep.subr.msk.bf16.mxu0 %vm456_vm1, %v382_v35  ;;  %405 = vmatprep.subr.msk.bf16.mxu1 %vm456_vm1, %v382_v35 }
  0x2d   :  { %387 = vmatpush3.bf16.xpose.msk.msra.mxu0 %vm456_vm1, %v385_v40  ;;  %413 = vmatpush3.bf16.xpose.msk.msra.mxu1 %vm456_vm1, %v385_v40 }
  0x2e   :  { %390 = vmatprep.subr.msk.bf16.mxu0 %vm456_vm1, %v388_v41  ;;  %406 = vmatprep.subr.msk.bf16.mxu1 %vm456_vm1, %v388_v41 }
  0x35   :  { %393 = vmatpush3.bf16.xpose.msk.msra.mxu0 %vm456_vm1, %v391_v46  ;;  %414 = vmatpush3.bf16.xpose.msk.msra.mxu1 %vm456_vm1, %v391_v46 }
  0x36   :  { %396 = vmatprep.subr.msk.bf16.mxu0 %vm456_vm1, %v394_v47  ;;  %407 = vmatprep.subr.msk.bf16.mxu1 %vm456_vm1, %v394_v47 }
  0x3d   :  { %399 = vmatpush3.bf16.xpose.msk.msra.mxu0 %vm456_vm1, %v397_v50  ;;  %415 = vmatpush3.bf16.xpose.msk.msra.mxu1 %vm456_vm1, %v397_v50 }
  0x44   :  { %349 = vmatmul.mubr.msk.f32.vlgmr.msra.gmra.mrb[0].mxu0 %vm60_vm0, %v499_v16  ;;  %351 = vmatmul.mubr.msk.f32.vlgmr.msra.gmra.mrb[0].mxu1 %vm60_vm0, %v504_v17 }
 0x117   :  { %v229_v58 = vpop.f32.mrb[0].mxu0  ;;  %v235_v59 = vpop.f32.mrb[0].mxu1 }
 0x118   :  { %v230_v60 = vadd.f32 %v229_v58, %v53_v56  ;;  %v231_v61 = vpop.f32.mrb[1].mxu0  ;;  %v237_v62 = vpop.f32.mrb[1].mxu1  ;;  %v236_v0 = vadd.f32 %v235_v59, %v53_v56 }
 0x119   :  { %v232_v63 = vadd.f32 %v231_v61, %v57_v57  ;;  %v238_v1 = vadd.f32 %v237_v62, %v57_v57 }
 0x11b   :  { %v240_v2 = vmax.f32 %v230_v60, %v232_v63  ;;  %v243_v3 = vmax.f32 %v236_v0, %v238_v1 }
 0x11d   :  { %241 = vmax.xlane.f32.xlu0 %v240_v2 }
 0x121   :  { %244 = vmax.xlane.f32.xlu0 %v243_v3 }
 0x1aa   :  { %v242_v4 = vpop.xlane.xlu0 %241 }
 0x1ab   :  { %v246_v5 = vsub.f32 %v230_v60, %v242_v4  ;;  %v247_v6 = vsub.f32 %v232_v63, %v242_v4 }
 0x1ad   :  { %v250_v7 = vmul.f32 1.442695, %v246_v5  ;;  %v252_v8 = vmul.f32 1.442695, %v247_v6 }
 0x1ae   :  { %v245_v9 = vpop.xlane.xlu0 %244 }
 0x1af   :  { %416 = vpow2.f32 %v250_v7  ;;  %v248_v10 = vsub.f32 %v236_v0, %v245_v9  ;;  %v249_v11 = vsub.f32 %v238_v1, %v245_v9 }
 0x1b0   :  { %418 = vpow2.f32 %v252_v8 }
 0x1b1   :  { %v254_v12 = vmul.f32 1.442695, %v248_v10  ;;  %v256_v13 = vmul.f32 1.442695, %v249_v11 }
 0x1b3   :  { %420 = vpow2.f32 %v254_v12 }
 0x1b4   :  { %422 = vpow2.f32 %v256_v13 }
 0x1b9   :  { %v417_v14 = vpop.eup %416 }
 0x1ba   :  { %v419_v15 = vpop.eup %418 }
 0x1bb   :  { %v258_v16 = vadd.f32 %v419_v15, %v417_v14 }
 0x1bd   :  { %v421_v17 = vpop.eup %420  ;;  %259 = vadd.xlane.f32.xlu1 %v258_v16 }
 0x1be   :  { %v423_v18 = vpop.eup %422 }
 0x1bf   :  { %v261_v19 = vadd.f32 %v423_v18, %v421_v17 }
 0x1c1   :  { %262 = vadd.xlane.f32.xlu1 %v261_v19 }
 0x24a   :  { %v260_v20 = vpop.xlane.xlu1 %259 }
 0x24b   :  { %424 = vlog2.f32 %v260_v20 }
 0x24e   :  { %v263_v21 = vpop.xlane.xlu1 %262 }
 0x24f   :  { %426 = vlog2.f32 %v263_v21 }
 0x255   :  { %v425_v22 = vpop.eup %424 }
 0x256   :  { %v265_v23 = vmul.f32 0.6931472, %v425_v22 }
 0x258   :  { %v268_v24 = vadd.f32 %v265_v23, %v242_v4 }
 0x259   :  { %v427_v25 = vpop.eup %426 }
 0x25a   :  { %v270_v26 = vsub.f32 %v230_v60, %v268_v24  ;;  %v271_v27 = vsub.f32 %v232_v63, %v268_v24  ;;  %v267_v28 = vmul.f32 0.6931472, %v427_v25 }
 0x25c   :  { %274 = vst [vmem:[%s650_s3] sm:$0xff] %v270_v26  ;;  %275 = vst [vmem:[%s650_s3 + $0x8] sm:$0xff] %v271_v27  ;;  %v269_v29 = vadd.f32 %v267_v28, %v245_v9 }
 0x25e   :  { %v272_v30 = vsub.f32 %v236_v0, %v269_v29  ;;  %v273_v31 = vsub.f32 %v238_v1, %v269_v29 }
 0x260   :  { %276 = vst [vmem:[%s650_s3 + $0x10] sm:$0xff] %v272_v30  ;;  %277 = vst [vmem:[%s650_s3 + $0x18] sm:$0xff] %v273_v31 }

</bundles_post_ra>
